<compile_context>
chip_gen: v7x
topology: tpu7x:2x2x1
jax: 0.10.0
libtpu: 0.0.40
codegen_flags: <defaults>
</compile_context>

<pallas_src>
import functools
import math

import jax
import jax.numpy as jnp
from jax.experimental import pallas as pl
from jax.experimental.pallas import tpu as pltpu

HIDDEN = 128
LANE = 128
SUBLANE = 8


def _round_up(n, m):
    return ((n + m - 1) // m) * m


def gamenet_kernel(x_ref, w1_ref, b1_ref, w2_ref, b2_ref, wh_ref, bh_ref,
                   out_ref, *, action_size):
    """One batch tile of the whole network.

    Output lanes: [0:action_size] = softmax policy,
                  [action_size]   = tanh value,
                  rest            = padding (sliced off in the wrapper).
    """
    x = x_ref[...]

    # fc1 + relu  (bias / activation math stays in f32)
    h1 = jnp.dot(x, w1_ref[...], preferred_element_type=jnp.float32) + b1_ref[...]
    h1 = jnp.maximum(h1, 0.0)

    # fc2 + relu
    h2 = jnp.dot(h1.astype(w2_ref.dtype), w2_ref[...],
                 preferred_element_type=jnp.float32) + b2_ref[...]
    h2 = jnp.maximum(h2, 0.0)

    # fused policy+value head: one lane-dense matmul over 128 output lanes
    logits = jnp.dot(h2.astype(wh_ref.dtype), wh_ref[...],
                     preferred_element_type=jnp.float32) + bh_ref[...]

    col = jax.lax.broadcasted_iota(jnp.int32, logits.shape, dimension=1)
    is_policy = col < action_size

    # masked softmax over the real policy columns only
    masked = jnp.where(is_policy, logits, -jnp.inf)
    m = jnp.max(masked, axis=-1, keepdims=True)
    e = jnp.exp(masked - m)
    denom = jnp.sum(e, axis=-1, keepdims=True)
    policy = e * pl.reciprocal(denom, approx=False)   # exact, keeps 1e-5 tol

    value = jnp.tanh(logits)                          # value lane at col==action_size

    out_ref[...] = jnp.where(is_policy, policy, value)


def pack_params(params, *, compute_dtype=jnp.float32):
    """Zero-pad / fuse the PyTorch-layout params once, ahead of time."""
    input_size = params["w1"].shape[0]
    action_size = params["wp"].shape[1]
    in_pad = _round_up(input_size, LANE)
    head_pad = _round_up(action_size + 1, LANE)

    w1 = jnp.zeros((in_pad, HIDDEN), jnp.float32).at[:input_size, :].set(params["w1"])
    wh = (jnp.zeros((HIDDEN, head_pad), jnp.float32)
          .at[:, :action_size].set(params["wp"])
          .at[:, action_size:action_size + 1].set(params["wv"]))
    bh = (jnp.zeros((1, head_pad), jnp.float32)
          .at[:, :action_size].set(params["bp"])
          .at[:, action_size:action_size + 1].set(params["bv"]))

    return dict(
        w1=w1.astype(compute_dtype),
        b1=params["b1"].astype(jnp.float32),
        w2=params["w2"].astype(compute_dtype),
        b2=params["b2"].astype(jnp.float32),
        wh=wh.astype(compute_dtype),
        bh=bh,
        input_size=input_size,
        action_size=action_size,
        in_pad=in_pad,
        head_pad=head_pad,
        compute_dtype=compute_dtype,
    )


def game_network_forward(x, packed, *, max_batch_tile=256):
    """x: (batch, input_size) f32 -> (policy (batch, A), value (batch, 1))."""
    batch, input_size = x.shape
    assert input_size == packed["input_size"]
    action_size = packed["action_size"]
    in_pad = packed["in_pad"]
    head_pad = packed["head_pad"]
    compute_dtype = packed["compute_dtype"]

    # Batch tile: multiple of 8 sublanes, capped so (weights + double-buffered
    # x/out tiles) stay far below the 32 MiB scoped-VMEM default (v7x-safe).
    tb = min(max_batch_tile, _round_up(batch, SUBLANE))
    padded_batch = _round_up(batch, tb)
    grid = (padded_batch // tb,)

    xp = (jnp.zeros((padded_batch, in_pad), compute_dtype)
          .at[:batch, :input_size].set(x.astype(compute_dtype)))

    def weight_spec(shape):
        # same block for every grid step -> weights stay VMEM-resident
        return pl.BlockSpec(shape, lambda i: (0, 0))

    itemsize = lambda a: a.size * a.dtype.itemsize
    flops = 2 * padded_batch * (in_pad * HIDDEN + HIDDEN * HIDDEN + HIDDEN * head_pad)
    transcendentals = padded_batch * 2 * head_pad
    bytes_accessed = (itemsize(xp) + 4 * padded_batch * head_pad
                      + sum(itemsize(packed[k])
                            for k in ("w1", "b1", "w2", "b2", "wh", "bh")))

    out = pl.pallas_call(
        functools.partial(gamenet_kernel, action_size=action_size),
        out_shape=jax.ShapeDtypeStruct((padded_batch, head_pad), jnp.float32),
        grid=grid,
        in_specs=[
            pl.BlockSpec((tb, in_pad), lambda i: (i, 0)),   # x batch tile
            weight_spec((in_pad, HIDDEN)),                  # w1
            weight_spec((1, HIDDEN)),                       # b1
            weight_spec((HIDDEN, HIDDEN)),                  # w2
            weight_spec((1, HIDDEN)),                       # b2
            weight_spec((HIDDEN, head_pad)),                # fused head weight
            weight_spec((1, head_pad)),                     # fused head bias
        ],
        out_specs=pl.BlockSpec((tb, head_pad), lambda i: (i, 0)),
        compiler_params=pltpu.CompilerParams(
            dimension_semantics=("parallel",)),             # megacore / v7x 2-TC
        cost_estimate=pl.CostEstimate(
            flops=flops,
            transcendentals=transcendentals,
            bytes_accessed=bytes_accessed),
    )(xp, packed["w1"], packed["b1"], packed["w2"], packed["b2"],
      packed["wh"], packed["bh"])

    policy = out[:batch, :action_size]
    value = out[:batch, action_size:action_size + 1]
    return policy, value


def init_params(key, input_size, action_size):
    """Deterministic PyTorch-style (uniform +-1/sqrt(fan_in)) init, (in, out) layout."""
    def linear(k, fan_in, fan_out):
        kw, kb = jax.random.split(k)
        bound = 1.0 / math.sqrt(fan_in)
        w = jax.random.uniform(kw, (fan_in, fan_out), jnp.float32, -bound, bound)
        b = jax.random.uniform(kb, (1, fan_out), jnp.float32, -bound, bound)
        return w, b

    k1, k2, k3, k4 = jax.random.split(key, 4)
    w1, b1 = linear(k1, input_size, HIDDEN)
    w2, b2 = linear(k2, HIDDEN, HIDDEN)
    wp, bp = linear(k3, HIDDEN, action_size)
    wv, bv = linear(k4, HIDDEN, 1)
    return dict(w1=w1, b1=b1, w2=w2, b2=b2, wp=wp, bp=bp, wv=wv, bv=bv)


def reference_forward(x, p):
    h1 = jnp.maximum(x @ p["w1"] + p["b1"], 0.0)
    h2 = jnp.maximum(h1 @ p["w2"] + p["b2"], 0.0)
    policy = jax.nn.softmax(h2 @ p["wp"] + p["bp"], axis=-1)
    value = jnp.tanh(h2 @ p["wv"] + p["bv"])
    return policy, value


if __name__ == "__main__":
    batch = 8
    input_size = 32
    action_size = 16

    key = jax.random.PRNGKey(0)
    kx, kp = jax.random.split(key)

    x = jax.random.normal(kx, (batch, input_size), jnp.float32)
    params = init_params(kp, input_size, action_size)
    packed = pack_params(params)        # compute_dtype=jnp.bfloat16 for v5e throughput

    policy, value = game_network_forward(x, packed)
    jax.block_until_ready((policy, value))

    # sanity check against pure-JAX reference
    ref_policy, ref_value = reference_forward(x, params)
    assert policy.shape == (batch, action_size)
    assert value.shape == (batch, 1)
    assert jnp.allclose(policy, ref_policy, atol=1e-5, rtol=1e-5)
    assert jnp.allclose(value, ref_value, atol=1e-5, rtol=1e-5)
    assert jnp.allclose(jnp.sum(policy, axis=-1), 1.0, atol=1e-5)

    print("KERNEL_OK")
</pallas_src>

<mosaic_0001>
module attributes {stable_mosaic.version = 11 : i64} {
  func.func @gamenet_kernel(%arg0: i32, %arg1: memref<8x128xf32, #tpu.memory_space<vmem>>, %arg2: memref<128x128xf32, #tpu.memory_space<vmem>>, %arg3: memref<1x128xf32, #tpu.memory_space<vmem>>, %arg4: memref<128x128xf32, #tpu.memory_space<vmem>>, %arg5: memref<1x128xf32, #tpu.memory_space<vmem>>, %arg6: memref<128x128xf32, #tpu.memory_space<vmem>>, %arg7: memref<1x128xf32, #tpu.memory_space<vmem>>, %arg8: memref<8x128xf32, #tpu.memory_space<vmem>>) attributes {dimension_semantics = [#tpu.dimension_semantics<parallel>], iteration_bounds = array<i64: 1>, scalar_prefetch = 0 : i64, scratch_operands = 0 : i64, tpu.core_type = #tpu.core_type<tc>, window_params = [{transform_indices = @transform_0, window_bounds = array<i64: 8, 128>}, {pipeline_mode = #tpu.pipeline_mode<synchronous>, transform_indices = @transform_1, window_bounds = array<i64: 128, 128>}, {pipeline_mode = #tpu.pipeline_mode<synchronous>, transform_indices = @transform_2, window_bounds = array<i64: 1, 128>}, {pipeline_mode = #tpu.pipeline_mode<synchronous>, transform_indices = @transform_3, window_bounds = array<i64: 128, 128>}, {pipeline_mode = #tpu.pipeline_mode<synchronous>, transform_indices = @transform_4, window_bounds = array<i64: 1, 128>}, {pipeline_mode = #tpu.pipeline_mode<synchronous>, transform_indices = @transform_5, window_bounds = array<i64: 128, 128>}, {pipeline_mode = #tpu.pipeline_mode<synchronous>, transform_indices = @transform_6, window_bounds = array<i64: 1, 128>}, {transform_indices = @transform_7, window_bounds = array<i64: 8, 128>}]} {
    %c0 = arith.constant 0 : index
    %c0_0 = arith.constant 0 : index
    %0 = vector.load %arg1[%c0, %c0_0] : memref<8x128xf32, #tpu.memory_space<vmem>>, vector<8x128xf32>
    %c0_1 = arith.constant 0 : index
    %c0_2 = arith.constant 0 : index
    %1 = vector.load %arg2[%c0_1, %c0_2] : memref<128x128xf32, #tpu.memory_space<vmem>>, vector<128x128xf32>
    %cst = arith.constant dense<0.000000e+00> : vector<8x128xf32>
    %2 = tpu.matmul %0, %1, %cst {dimension_numbers = #tpu.dot_dimension_numbers<[1], [0], [0], [1], [0, 0, 1, 1], [], []>} : vector<8x128xf32>, vector<128x128xf32>, vector<8x128xf32> -> vector<8x128xf32>
    %c0_3 = arith.constant 0 : index
    %c0_4 = arith.constant 0 : index
    %3 = vector.load %arg3[%c0_3, %c0_4] : memref<1x128xf32, #tpu.memory_space<vmem>>, vector<1x128xf32>
    %4 = vector.broadcast %3 : vector<1x128xf32> to vector<8x128xf32>
    %5 = arith.addf %2, %4 : vector<8x128xf32>
    %cst_5 = arith.constant 0.000000e+00 : f32
    %6 = vector.broadcast %cst_5 : f32 to vector<8x128xf32>
    %7 = arith.maximumf %5, %6 : vector<8x128xf32>
    %c0_6 = arith.constant 0 : index
    %c0_7 = arith.constant 0 : index
    %8 = vector.load %arg4[%c0_6, %c0_7] : memref<128x128xf32, #tpu.memory_space<vmem>>, vector<128x128xf32>
    %cst_8 = arith.constant dense<0.000000e+00> : vector<8x128xf32>
    %9 = tpu.matmul %7, %8, %cst_8 {dimension_numbers = #tpu.dot_dimension_numbers<[1], [0], [0], [1], [0, 0, 1, 1], [], []>} : vector<8x128xf32>, vector<128x128xf32>, vector<8x128xf32> -> vector<8x128xf32>
    %c0_9 = arith.constant 0 : index
    %c0_10 = arith.constant 0 : index
    %10 = vector.load %arg5[%c0_9, %c0_10] : memref<1x128xf32, #tpu.memory_space<vmem>>, vector<1x128xf32>
    %11 = vector.broadcast %10 : vector<1x128xf32> to vector<8x128xf32>
    %12 = arith.addf %9, %11 : vector<8x128xf32>
    %cst_11 = arith.constant 0.000000e+00 : f32
    %13 = vector.broadcast %cst_11 : f32 to vector<8x128xf32>
    %14 = arith.maximumf %12, %13 : vector<8x128xf32>
    %c0_12 = arith.constant 0 : index
    %c0_13 = arith.constant 0 : index
    %15 = vector.load %arg6[%c0_12, %c0_13] : memref<128x128xf32, #tpu.memory_space<vmem>>, vector<128x128xf32>
    %cst_14 = arith.constant dense<0.000000e+00> : vector<8x128xf32>
    %16 = tpu.matmul %14, %15, %cst_14 {dimension_numbers = #tpu.dot_dimension_numbers<[1], [0], [0], [1], [0, 0, 1, 1], [], []>} : vector<8x128xf32>, vector<128x128xf32>, vector<8x128xf32> -> vector<8x128xf32>
    %c0_15 = arith.constant 0 : index
    %c0_16 = arith.constant 0 : index
    %17 = vector.load %arg7[%c0_15, %c0_16] : memref<1x128xf32, #tpu.memory_space<vmem>>, vector<1x128xf32>
    %18 = vector.broadcast %17 : vector<1x128xf32> to vector<8x128xf32>
    %19 = arith.addf %16, %18 : vector<8x128xf32>
    %20 = tpu.iota {dimensions = array<i32: 1>} : vector<8x128xi32>
    %c16_i32 = arith.constant 16 : i32
    %21 = vector.broadcast %c16_i32 : i32 to vector<8x128xi32>
    %22 = arith.cmpi slt, %20, %21 : vector<8x128xi32>
    %cst_17 = arith.constant 0xFF800000 : f32
    %23 = vector.broadcast %cst_17 : f32 to vector<8x128xf32>
    %24 = arith.select %22, %19, %23 : vector<8x128xi1>, vector<8x128xf32>
    %cst_18 = arith.constant dense<0xFF800000> : vector<8xf32>
    %25 = vector.multi_reduction <maximumf>, %24, %cst_18 [1] : vector<8x128xf32> to vector<8xf32>
    %26 = vector.shape_cast %25 : vector<8xf32> to vector<8x1xf32>
    %27 = vector.broadcast %26 : vector<8x1xf32> to vector<8x128xf32>
    %28 = arith.subf %24, %27 : vector<8x128xf32>
    %29 = math.exp %28 : vector<8x128xf32>
    %cst_19 = arith.constant dense<0.000000e+00> : vector<8xf32>
    %30 = vector.multi_reduction <add>, %29, %cst_19 [1] : vector<8x128xf32> to vector<8xf32>
    %31 = vector.shape_cast %30 : vector<8xf32> to vector<8x1xf32>
    %32 = tpu.reciprocal %31 : vector<8x1xf32> -> vector<8x1xf32>
    %33 = vector.broadcast %32 : vector<8x1xf32> to vector<8x128xf32>
    %34 = arith.mulf %29, %33 : vector<8x128xf32>
    %35 = math.tanh %19 : vector<8x128xf32>
    %36 = arith.select %22, %34, %35 : vector<8x128xi1>, vector<8x128xf32>
    %c0_20 = arith.constant 0 : index
    %c0_21 = arith.constant 0 : index
    %37 = vector.load %arg8[%c0_20, %c0_21] : memref<8x128xf32, #tpu.memory_space<vmem>>, vector<8x128xf32>
    tpu.vector_store %arg8[%c0_20, %c0_21], %36 {strides = array<i32>} : memref<8x128xf32, #tpu.memory_space<vmem>>, vector<8x128xf32>,
    return
  }
  func.func @transform_0(%arg0: i32) -> (i32, i32) {
    %c0_i32 = arith.constant 0 : i32
    %c0_i32_0 = arith.constant 0 : i32
    return %arg0, %c0_i32 : i32, i32
  }
  func.func @transform_1(%arg0: i32) -> (i32, i32) {
    %c0_i32 = arith.constant 0 : i32
    %c0_i32_0 = arith.constant 0 : i32
    %c0_i32_1 = arith.constant 0 : i32
    return %c0_i32, %c0_i32_0 : i32, i32
  }
  func.func @transform_2(%arg0: i32) -> (i32, i32) {
    %c0_i32 = arith.constant 0 : i32
    %c0_i32_0 = arith.constant 0 : i32
    %c0_i32_1 = arith.constant 0 : i32
    return %c0_i32, %c0_i32_0 : i32, i32
  }
  func.func @transform_3(%arg0: i32) -> (i32, i32) {
    %c0_i32 = arith.constant 0 : i32
    %c0_i32_0 = arith.constant 0 : i32
    %c0_i32_1 = arith.constant 0 : i32
    return %c0_i32, %c0_i32_0 : i32, i32
  }
  func.func @transform_4(%arg0: i32) -> (i32, i32) {
    %c0_i32 = arith.constant 0 : i32
    %c0_i32_0 = arith.constant 0 : i32
    %c0_i32_1 = arith.constant 0 : i32
    return %c0_i32, %c0_i32_0 : i32, i32
  }
  func.func @transform_5(%arg0: i32) -> (i32, i32) {
    %c0_i32 = arith.constant 0 : i32
    %c0_i32_0 = arith.constant 0 : i32
    %c0_i32_1 = arith.constant 0 : i32
    return %c0_i32, %c0_i32_0 : i32, i32
  }
  func.func @transform_6(%arg0: i32) -> (i32, i32) {
    %c0_i32 = arith.constant 0 : i32
    %c0_i32_0 = arith.constant 0 : i32
    %c0_i32_1 = arith.constant 0 : i32
    return %c0_i32, %c0_i32_0 : i32, i32
  }
  func.func @transform_7(%arg0: i32) -> (i32, i32) {
    %c0_i32 = arith.constant 0 : i32
    %c0_i32_0 = arith.constant 0 : i32
    return %arg0, %c0_i32 : i32, i32
  }
}

</mosaic_0001>

<bundles_post_ra>
// kernel: tpu_custom_call.1
= control target key start
LH: loop header
LB: loop body
LE: loop exit
PB: predicated region body
PF: predicated region fallthrough
CT: control target
= control target key end

     0   :  { %12 = vsyncpa [#allocation3], 0  ;;  %s920_s0 = inlined_call_operand.hbm [shape: f32[8,128], index: 0, kind: input, shape index: {}]   ;;  %s921_s1 = inlined_call_operand.hbm [shape: f32[128,128], index: 1, kind: input, shape index: {}]   ;;  %s922_s2 = inlined_call_operand.vmem [shape: f32[1,128], index: 2, kind: input, shape index: {}]   ;;  %s923_s3 = inlined_call_operand.hbm [shape: f32[128,128], index: 3, kind: input, shape index: {}]   ;;  %s924_s4 = inlined_call_operand.vmem [shape: f32[1,128], index: 4, kind: input, shape index: {}]   ;;  %s925_s5 = inlined_call_operand.hbm [shape: f32[128,128], index: 5, kind: input, shape index: {}]   ;;  %s926_s6 = inlined_call_operand.vmem [shape: f32[1,128], index: 6, kind: input, shape index: {}]   ;;  %s927_s7 = inlined_call_operand.hbm [shape: f32[8,128], index: 7, kind: output, shape index: {}]  }
   0x1   :  { %13 = vsyncpa [#allocation6], 0 }
   0x2   :  { %14 = vsyncpa [#allocation9], 0 }
   0x3   :  { %15 = vsyncpa [#allocation4], 0  ;;  %s760_s24 = smov [#allocation5]   ;;  %s642_s28 = scalar_lea.hbm %s921_s1, 2048 }
   0x4   :  { %s31_s25 = sshll.u32 %s760_s24, 4  ;;  %p643_p0 = scmp.ne.s32.totalorder %s921_s1, %s642_s28  ;;  %s32_s25 = int_to_ptr.vmem [resolvable:$true] %s31_s25 }
   0x5   :  { %p646_p1 = scmp.lt.u32.totalorder %s642_s28, %s921_s1 }
   0x7   :  { %p648_p2 = pnand %p646_p1, %p643_p0 }
   0x9   :  { %651 = shalt.err (!%p648_p2)
}
   0xa   :  { %s652_s10 = scalar_lea.vmem %s32_s25, 2048  ;;  %p657_p4 = scmp.lt.s32.totalorder %s32_s25, %s32_s25 }
   0xb   :  { %p653_p3 = scmp.ne.s32.totalorder %s32_s25, %s652_s10  ;;  %p658_p5 = scmp.lt.s32.totalorder %s652_s10, %s652_s10 }
   0xd   :  { %p659_p6 = por %p658_p5, %p657_p4 }
   0xf   :  { %p660_p7 = pnand %p659_p6, %p653_p3 }
  0x11   :  { %663 = shalt.err (!%p660_p7)
}
  0x12   :  { %s761_s11 = smov 128   ;;  %s762_s12 = smov 8  }
  0x13   :  { %37 = dma.hbm_to_vmem [thread:$0]  %s921_s1, 2048, %s32_s25, [#allocation6], %s761_s11, %s761_s11, %s762_s12  }
  0x14   :  { %s763_s15 = smov [#allocation2]   ;;  %s764_s17 = smov [#allocation7]  }
  0x15   :  { %s22_s16 = sshll.u32 %s763_s15, 4  ;;  %s45_s18 = sshll.u32 %s764_s17, 4  ;;  %s23_s16 = int_to_ptr.vmem [resolvable:$true] %s22_s16  ;;  %s46_s18 = int_to_ptr.vmem [resolvable:$true] %s45_s18 }
  0x16   :  { %s664_s21 = scalar_lea.hbm %s920_s0, 128 }
  0x17   :  { %p665_p8 = scmp.ne.s32.totalorder %s920_s0, %s664_s21  ;;  %p668_p9 = scmp.lt.u32.totalorder %s664_s21, %s920_s0 }
  0x19   :  { %p670_p10 = pnand %p668_p9, %p665_p8 }
  0x1b   :  { %673 = shalt.err (!%p670_p10)
}
  0x1c   :  { %s674_s1 = scalar_lea.vmem %s23_s16, 128  ;;  %p679_p12 = scmp.lt.s32.totalorder %s23_s16, %s23_s16 }
  0x1d   :  { %p675_p11 = scmp.ne.s32.totalorder %s23_s16, %s674_s1  ;;  %p680_p13 = scmp.lt.s32.totalorder %s674_s1, %s674_s1 }
  0x1f   :  { %p681_p0 = por %p680_p13, %p679_p12 }
  0x21   :  { %p682_p1 = pnand %p681_p0, %p675_p11 }
  0x23   :  { %685 = shalt.err (!%p682_p1)
}
  0x24   :  { %25 = dma.hbm_to_vmem [thread:$0]  %s920_s0, 128, %s23_s16, [#allocation3]  }
  0x25   :  { %s686_s30 = scalar_lea.hbm %s923_s3, 2048 }
  0x26   :  { %p687_p2 = scmp.ne.s32.totalorder %s923_s3, %s686_s30  ;;  %p690_p3 = scmp.lt.u32.totalorder %s686_s30, %s923_s3 }
  0x28   :  { %p692_p4 = pnand %p690_p3, %p687_p2 }
  0x2a   :  { %695 = shalt.err (!%p692_p4)
}
  0x2b   :  { %s696_s14 = scalar_lea.vmem %s46_s18, 2048  ;;  %p701_p6 = scmp.lt.s32.totalorder %s46_s18, %s46_s18 }
  0x2c   :  { %p697_p5 = scmp.ne.s32.totalorder %s46_s18, %s696_s14  ;;  %p702_p7 = scmp.lt.s32.totalorder %s696_s14, %s696_s14 }
  0x2e   :  { %p703_p8 = por %p702_p7, %p701_p6 }
  0x30   :  { %p704_p9 = pnand %p703_p8, %p697_p5 }
  0x32   :  { %707 = shalt.err (!%p704_p9)
}
  0x33   :  { %51 = dma.hbm_to_vmem [thread:$0]  %s923_s3, 2048, %s46_s18, [#allocation6], %s761_s11, %s761_s11, %s762_s12  }
  0x34   :  { %s765_s16 = smov [#allocation8]   ;;  %s708_s21 = scalar_lea.hbm %s925_s5, 2048 }
  0x35   :  { %s59_s17 = sshll.u32 %s765_s16, 4  ;;  %p709_p10 = scmp.ne.s32.totalorder %s925_s5, %s708_s21  ;;  %s60_s17 = int_to_ptr.vmem [resolvable:$true] %s59_s17 }
  0x36   :  { %p712_p11 = scmp.lt.u32.totalorder %s708_s21, %s925_s5 }
  0x38   :  { %p714_p12 = pnand %p712_p11, %p709_p10 }
  0x3a   :  { %717 = shalt.err (!%p714_p12)
}
  0x3b   :  { %s718_s1 = scalar_lea.vmem %s60_s17, 2048  ;;  %p723_p0 = scmp.lt.s32.totalorder %s60_s17, %s60_s17 }
  0x3c   :  { %p719_p13 = scmp.ne.s32.totalorder %s60_s17, %s718_s1  ;;  %p724_p1 = scmp.lt.s32.totalorder %s718_s1, %s718_s1 }
  0x3e   :  { %p725_p2 = por %p724_p1, %p723_p0 }
  0x40   :  { %p726_p3 = pnand %p725_p2, %p719_p13 }
  0x42   :  { %729 = shalt.err (!%p726_p3)
}
  0x43   :  { %65 = dma.hbm_to_vmem [thread:$0]  %s925_s5, 2048, %s60_s17, [#allocation9], %s761_s11, %s761_s11, %s762_s12  }
  0x44   :  { %752 = dma.done.wait [#allocation3], 128  }
  0x45   :  { %753 = vsyncadd [#allocation3], 4294967168 }
  0x46   :  { %754 = dma.done.wait [#allocation6], 4096  }
  0x47   :  { %755 = vsyncadd [#allocation6], 4294963200 }
  0x48   :  { %756 = dma.done.wait [#allocation9], 2048  }
  0x49   :  { %757 = vsyncadd [#allocation9], 4294965248  ;;  %v766_v0 = vmov 0.0|0.0   ;;  %vm767_vm0 = vmmov 0   ;;  %v768_v1 = vmov 0.0   ;;  %v81_v2 = vld [vmem:[#allocation5] sm:$0xff] }
  0x4a   :  { %554 = vmatprep.subr.bf16.mxu0 %v766_v0  ;;  %481 = vmatprep.mubr.msk.f32.mxu0 %vm767_vm0, %v768_v1  ;;  %v82_v3 = vld [vmem:[#allocation5 + $0x8] sm:$0xff]  ;;  %v83_v4 = vld [vmem:[#allocation5 + $0x10] sm:$0xff]  ;;  %v84_v6 = vld [vmem:[#allocation5 + $0x18] sm:$0xff] }
  0x4b   :  { %578 = vmatprep.subr.bf16.mxu1 %v766_v0  ;;  %516 = vmatprep.mubr.msk.f32.mxu1 %vm767_vm0, %v768_v1  ;;  %v555_v5 = vpack.c.bf16 %v82_v3, %v81_v2  ;;  %v558_v7 = vpack.c.bf16 %v84_v6, %v83_v4  ;;  %v85_v8 = vld [vmem:[#allocation5 + $0x20] sm:$0xff]  ;;  %v86_v9 = vld [vmem:[#allocation5 + $0x28] sm:$0xff]  ;;  %v177_v12 = vld [vmem:[#allocation7 + $0x10] sm:$0xff] }
  0x4c   :  { %v175_v10 = vld [vmem:[#allocation7] sm:$0xff]  ;;  %v176_v11 = vld [vmem:[#allocation7 + $0x8] sm:$0xff]  ;;  %v178_v13 = vld [vmem:[#allocation7 + $0x18] sm:$0xff]  ;;  %v561_v14 = vpack.c.bf16 %v86_v9, %v85_v8 }
  0x4d   :  { %556 = vmatpush3.bf16.msra.mxu0 %v555_v5  ;;  %v579_v15 = vpack.c.bf16 %v176_v11, %v175_v10  ;;  %v87_v16 = vld [vmem:[#allocation5 + $0x30] sm:$0xff]  ;;  %v88_v17 = vld [vmem:[#allocation5 + $0x38] sm:$0xff]  ;;  %v582_v18 = vpack.c.bf16 %v178_v13, %v177_v12  ;;  %v179_v19 = vld [vmem:[#allocation7 + $0x20] sm:$0xff] }
  0x4e   :  { %557 = vmatprep.subr.bf16.mxu0 %v766_v0  ;;  %v180_v20 = vld [vmem:[#allocation7 + $0x28] sm:$0xff]  ;;  %v564_v21 = vpack.c.bf16 %v88_v17, %v87_v16  ;;  %v89_v22 = vld [vmem:[#allocation5 + $0x40] sm:$0xff]  ;;  %v181_v25 = vld [vmem:[#allocation7 + $0x30] sm:$0xff] }
  0x4f   :  { %580 = vmatpush3.bf16.msra.mxu1 %v579_v15  ;;  %v90_v23 = vld [vmem:[#allocation5 + $0x48] sm:$0xff]  ;;  %v585_v24 = vpack.c.bf16 %v180_v20, %v179_v19  ;;  %v182_v26 = vld [vmem:[#allocation7 + $0x38] sm:$0xff]  ;;  %v91_v28 = vld [vmem:[#allocation5 + $0x50] sm:$0xff] }
  0x50   :  { %581 = vmatprep.subr.bf16.mxu1 %v766_v0  ;;  %v567_v27 = vpack.c.bf16 %v90_v23, %v89_v22  ;;  %v92_v29 = vld [vmem:[#allocation5 + $0x58] sm:$0xff]  ;;  %v588_v30 = vpack.c.bf16 %v182_v26, %v181_v25  ;;  %v183_v31 = vld [vmem:[#allocation7 + $0x40] sm:$0xff]  ;;  %v184_v32 = vld [vmem:[#allocation7 + $0x48] sm:$0xff] }
  0x51   :  { %559 = vmatpush3.bf16.msra.mxu0 %v558_v7  ;;  %v570_v33 = vpack.c.bf16 %v92_v29, %v91_v28  ;;  %v93_v34 = vld [vmem:[#allocation5 + $0x60] sm:$0xff]  ;;  %v94_v35 = vld [vmem:[#allocation5 + $0x68] sm:$0xff]  ;;  %v591_v36 = vpack.c.bf16 %v184_v32, %v183_v31  ;;  %v185_v37 = vld [vmem:[#allocation7 + $0x50] sm:$0xff] }
  0x52   :  { %560 = vmatprep.subr.bf16.mxu0 %v766_v0  ;;  %v186_v38 = vld [vmem:[#allocation7 + $0x58] sm:$0xff]  ;;  %v573_v39 = vpack.c.bf16 %v94_v35, %v93_v34  ;;  %v95_v40 = vld [vmem:[#allocation5 + $0x70] sm:$0xff]  ;;  %v187_v43 = vld [vmem:[#allocation7 + $0x60] sm:$0xff] }
  0x53   :  { %583 = vmatpush3.bf16.msra.mxu1 %v582_v18  ;;  %v96_v41 = vld [vmem:[#allocation5 + $0x78] sm:$0xff]  ;;  %v594_v42 = vpack.c.bf16 %v186_v38, %v185_v37  ;;  %v188_v44 = vld [vmem:[#allocation7 + $0x68] sm:$0xff]  ;;  %v189_v48 = vld [vmem:[#allocation7 + $0x70] sm:$0xff] }
  0x54   :  { %584 = vmatprep.subr.bf16.mxu1 %v766_v0  ;;  %v576_v45 = vpack.c.bf16 %v96_v41, %v95_v40  ;;  %v597_v46 = vpack.c.bf16 %v188_v44, %v187_v43  ;;  %v80_v47 = vld [vmem:[#allocation2] sm:$0xff]  ;;  %v269_v51 = vld [vmem:[#allocation8] sm:$0xff]  ;;  %v270_v52 = vld [vmem:[#allocation8 + $0x8] sm:$0xff] }
  0x55   :  { %562 = vmatpush3.bf16.msra.mxu0 %v561_v14  ;;  %v190_v49 = vld [vmem:[#allocation7 + $0x78] sm:$0xff]  ;;  %v271_v53 = vld [vmem:[#allocation8 + $0x10] sm:$0xff]  ;;  %v603_v54 = vpack.c.bf16 %v270_v52, %v269_v51  ;;  %v273_v57 = vld [vmem:[#allocation8 + $0x20] sm:$0xff] }
  0x56   :  { %563 = vmatprep.subr.bf16.mxu0 %v766_v0  ;;  %v600_v50 = vpack.c.bf16 %v190_v49, %v189_v48  ;;  %v272_v55 = vld [vmem:[#allocation8 + $0x18] sm:$0xff]  ;;  %v274_v58 = vld [vmem:[#allocation8 + $0x28] sm:$0xff]  ;;  %v275_v60 = vld [vmem:[#allocation8 + $0x30] sm:$0xff] }
  0x57   :  { %586 = vmatpush3.bf16.msra.mxu1 %v585_v24  ;;  %v606_v56 = vpack.c.bf16 %v272_v55, %v271_v53  ;;  %v609_v59 = vpack.c.bf16 %v274_v58, %v273_v57  ;;  %v276_v61 = vld [vmem:[#allocation8 + $0x38] sm:$0xff]  ;;  %v277_v63 = vld [vmem:[#allocation8 + $0x40] sm:$0xff]  ;;  %v279_v3 = vld [vmem:[#allocation8 + $0x50] sm:$0xff] }
  0x58   :  { %587 = vmatprep.subr.bf16.mxu1 %v766_v0  ;;  %v612_v62 = vpack.c.bf16 %v276_v61, %v275_v60  ;;  %v280_v4 = vld [vmem:[#allocation8 + $0x58] sm:$0xff]  ;;  %v281_v6 = vld [vmem:[#allocation8 + $0x60] sm:$0xff]  ;;  %v282_v7 = vld [vmem:[#allocation8 + $0x68] sm:$0xff] }
  0x59   :  { %565 = vmatpush3.bf16.msra.mxu0 %v564_v21  ;;  %v618_v5 = vpack.c.bf16 %v280_v4, %v279_v3  ;;  %v621_v8 = vpack.c.bf16 %v282_v7, %v281_v6  ;;  %v395_v9 = vld [vmem:[%s922_s2] ss:$0 sm:$0xff]  ;;  %v283_v14 = vld [vmem:[#allocation8 + $0x70] sm:$0xff]  ;;  %v362_v21 = vlaneseq }
  0x5a   :  { %566 = vmatprep.subr.bf16.mxu0 %v766_v0  ;;  %v284_v15 = vld [vmem:[#allocation8 + $0x78] sm:$0xff] }
  0x5b   :  { %589 = vmatpush3.bf16.msra.mxu1 %v588_v30  ;;  %v624_v16 = vpack.c.bf16 %v284_v15, %v283_v14  ;;  %v396_v17 = vld [vmem:[%s924_s4] ss:$0 sm:$0xff]  ;;  %v363_v22 = vand.u32 127, %v362_v21  ;;  %s769_s4 = smov [#allocation10]  }
  0x5c   :  { %590 = vmatprep.subr.bf16.mxu1 %v766_v0  ;;  %v397_v23 = vld [vmem:[%s926_s6] ss:$0 sm:$0xff]  ;;  %s384_s28 = sshll.u32 %s769_s4, 4  ;;  %s385_s28 = int_to_ptr.vmem [resolvable:$true] %s384_s28 }
  0x5d   :  { %568 = vmatpush3.bf16.msra.mxu0 %v567_v27  ;;  %vm364_vm1 = vcmp.lt.s32.totalorder %v363_v22, 16  ;;  %s730_s6 = scalar_lea.vmem %s385_s28, 128  ;;  %p735_p5 = scmp.lt.s32.totalorder %s385_s28, %s385_s28 }
  0x5e   :  { %569 = vmatprep.subr.bf16.mxu0 %v766_v0  ;;  %p731_p4 = scmp.ne.s32.totalorder %s385_s28, %s730_s6  ;;  %p736_p6 = scmp.lt.s32.totalorder %s730_s6, %s730_s6 }
  0x5f   :  { %592 = vmatpush3.bf16.msra.mxu1 %v591_v36 }
  0x60   :  { %593 = vmatprep.subr.bf16.mxu1 %v766_v0  ;;  %p737_p7 = por %p736_p6, %p735_p5 }
  0x61   :  { %571 = vmatpush3.bf16.msra.mxu0 %v570_v33 }
  0x62   :  { %572 = vmatprep.subr.bf16.mxu0 %v766_v0  ;;  %p738_p8 = pnand %p737_p7, %p731_p4 }
  0x63   :  { %595 = vmatpush3.bf16.msra.mxu1 %v594_v42 }
  0x64   :  { %596 = vmatprep.subr.bf16.mxu1 %v766_v0 }
  0x65   :  { %574 = vmatpush3.bf16.msra.mxu0 %v573_v39 }
  0x66   :  { %575 = vmatprep.subr.bf16.mxu0 %v766_v0 }
  0x67   :  { %598 = vmatpush3.bf16.msra.mxu1 %v597_v46 }
  0x68   :  { %599 = vmatprep.subr.bf16.mxu1 %v766_v0 }
  0x69   :  { %577 = vmatpush3.bf16.msra.mxu0 %v576_v45 }
  0x6a   :  { %602 = vmatprep.subr.bf16.mxu0 %v766_v0 }
  0x6b   :  { %601 = vmatpush3.bf16.msra.mxu1 %v600_v50 }
  0x6c   :  { %482 = vmatmul.mubr.f32.vlgmr.msra.gmra.mrb[0].mxu0 %v80_v47 }
  0x6d   :  { %551 = vmatprep.mubr.msk.f32.mxu0 %vm767_vm0, %v768_v1  ;;  %604 = vmatpush3.bf16.msra.mxu0 %v603_v54  ;;  %v278_v1 = vld [vmem:[#allocation8 + $0x48] sm:$0xff] }
  0x6e   :  { %605 = vmatprep.subr.bf16.mxu0 %v766_v0  ;;  %v615_v2 = vpack.c.bf16 %v278_v1, %v277_v63 }
  0x71   :  { %607 = vmatpush3.bf16.msra.mxu0 %v606_v56 }
  0x72   :  { %608 = vmatprep.subr.bf16.mxu0 %v766_v0 }
  0x75   :  { %610 = vmatpush3.bf16.msra.mxu0 %v609_v59 }
  0x76   :  { %611 = vmatprep.subr.bf16.mxu0 %v766_v0 }
  0x79   :  { %613 = vmatpush3.bf16.msra.mxu0 %v612_v62 }
  0x7a   :  { %614 = vmatprep.subr.bf16.mxu0 %v766_v0 }
  0x7d   :  { %616 = vmatpush3.bf16.msra.mxu0 %v615_v2 }
  0x7e   :  { %617 = vmatprep.subr.bf16.mxu0 %v766_v0 }
  0x81   :  { %619 = vmatpush3.bf16.msra.mxu0 %v618_v5 }
  0x82   :  { %620 = vmatprep.subr.bf16.mxu0 %v766_v0 }
  0x85   :  { %622 = vmatpush3.bf16.msra.mxu0 %v621_v8 }
  0x86   :  { %623 = vmatprep.subr.bf16.mxu0 %v766_v0 }
  0x89   :  { %625 = vmatpush3.bf16.msra.mxu0 %v624_v16 }
 0x13f   :  { %v170_v10 = vpop.f32.mrb[0].mxu0 }
 0x140   :  { %v171_v11 = vadd.f32 %v395_v9, %v170_v10  ;;  %v483_v12 = vpop.f32.mrb[1].mxu0 }
 0x142   :  { %v174_v13 = vmax.f32 %v171_v11, 0.0 }
 0x144   :  { %517 = vmatmul.mubr.f32.vlgmr.msra.gmra.mrb[0].mxu1 %v174_v13 }
 0x217   :  { %v264_v18 = vpop.f32.mrb[0].mxu1 }
 0x218   :  { %v265_v19 = vadd.f32 %v396_v17, %v264_v18  ;;  %v518_v0 = vpop.f32.mrb[1].mxu1 }
 0x21a   :  { %v268_v20 = vmax.f32 %v265_v19, 0.0 }
 0x21c   :  { %552 = vmatmul.mubr.f32.vlgmr.msra.gmra.mrb[2].mxu0 %v268_v20 }
 0x2ef   :  { %v358_v24 = vpop.f32.mrb[2].mxu0 }
 0x2f0   :  { %v359_v25 = vadd.f32 %v397_v23, %v358_v24  ;;  %v553_v26 = vpop.f32.mrb[3].mxu0 }
 0x2f2   :  { %v365_v27 = vsel %vm364_vm1, %v359_v25, -inf }
 0x2f3   :  { %366 = vmax.xlane.f32.xlu0 %v365_v27 }
 0x380   :  { %v367_v28 = vpop.xlane.xlu0 %366 }
 0x381   :  { %v368_v29 = vsub.f32 %v365_v27, %v367_v28 }
 0x383   :  { %v369_v30 = vmul.f32 1.442695, %v368_v29 }
 0x385   :  { %636 = vpow2.f32 %v369_v30 }
 0x38f   :  { %v637_v31 = vpop.eup %636 }
 0x390   :  { %371 = vadd.xlane.f32.xlu0 %v637_v31 }
 0x41d   :  { %v372_v32 = vpop.xlane.xlu0 %371 }
 0x41e   :  { %638 = vrcp.f32 %v372_v32 }
 0x41f   :  { %640 = vtanh.f32 %v359_v25 }
 0x428   :  { %v639_v33 = vpop.eup %638 }
 0x429   :  { %v374_v34 = vmul.f32 %v639_v33, %v637_v31  ;;  %v641_v35 = vpop.eup %640 }
 0x42b   :  { %v376_v36 = vsel %vm364_vm1, %v374_v34, %v641_v35 }
 0x42c   :  { %377 = vst [vmem:[#allocation10] sm:$0xff] %v376_v36 }
 0x42d   :  { %741 = shalt.err (!%p738_p8)
}
 0x42e   :  { %s742_s8 = scalar_lea.hbm %s927_s7, 128 }
 0x42f   :  { %p743_p9 = scmp.ne.s32.totalorder %s927_s7, %s742_s8  ;;  %p746_p10 = scmp.lt.u32.totalorder %s742_s8, %s927_s7 }
 0x431   :  { %p748_p11 = pnand %p746_p10, %p743_p9 }
 0x433   :  { %751 = shalt.err (!%p748_p11)
}
 0x434   :  { %387 = dma.vmem_to_hbm [thread:$0]  %s385_s28, 128, %s927_s7, [#allocation4]  }
 0x435   :  { %758 = dma.done.wait [#allocation4], 128  }
 0x436   :  { %759 = vsyncadd [#allocation4], 4294967168 }
 0x437   :  { %391 = vsyncpa [#allocation3], 1 }
 0x438   :  { %392 = vsyncpa [#allocation6], 1 }
 0x439   :  { %393 = vsyncpa [#allocation9], 1 }
 0x43a   :  { %394 = vsyncpa [#allocation4], 1 }

</bundles_post_ra>
